<compile_context>
chip_gen: v6e
topology: v6e:2x2x1
jax: 0.10.0
libtpu: 0.0.40
codegen_flags: <defaults>
</compile_context>

<pallas_src>
from functools import partial

import jax
import jax.numpy as jnp
from jax.experimental import pallas as pl
from jax.experimental.pallas import tpu as pltpu

NEG_INF = -1e30
VMEM_LIMIT = 32 * 1024 * 1024  # safe on v5e/v6e/v7x, above all scoped defaults


# --------------------------------------------------------------------------
# Kernel 1: fused projections + attention logit terms, tiled over nodes.
# --------------------------------------------------------------------------
def _proj_kernel(h_ref, w_ref, al_ref, ar_ref, ft_ref, res_ref, a_ref,
                 *, num_heads, out_dim):
    H, D = num_heads, out_dim
    x = h_ref[...].astype(jnp.bfloat16)                       # (TN, H*Din)
    # Block-diagonal fused weight: one MXU pass yields [ft | res] for all heads.
    proj = jnp.dot(x, w_ref[...], preferred_element_type=jnp.float32)
    ft = proj[:, :H * D]                                      # (TN, H*D) f32
    ft_ref[...] = ft.astype(ft_ref.dtype)                     # bf16 for P@V later
    res_ref[...] = proj[:, H * D:]                            # (TN, H*D) f32

    # Per-head attention logit terms: a1 (source / attn_l), a2 (dest / attn_r).
    la, lr = [], []
    for hd in range(H):
        fh = ft[:, hd * D:(hd + 1) * D]                       # (TN, D)
        la.append(jnp.sum(fh * al_ref[hd:hd + 1, :], axis=-1, keepdims=True))
        lr.append(jnp.sum(fh * ar_ref[hd:hd + 1, :], axis=-1, keepdims=True))
    a_ref[...] = jnp.concatenate(la + lr, axis=-1)            # (TN, 2H)


# --------------------------------------------------------------------------
# Kernel 2: masked softmax + aggregation, tiled over destination nodes.
# --------------------------------------------------------------------------
def _attn_kernel(adj_ref, ft_ref, a1_ref, a2_ref, res_ref, o_ref,
                 *, num_heads, out_dim, alpha):
    H, D = num_heads, out_dim
    # adj_ref[v, u] != 0 iff edge u -> v ; loaded once, reused across heads.
    edge = adj_ref[...] > 0                                   # (TV, N) bool
    outs = []
    for hd in range(H):
        # e[v, u] = leaky_relu(a1[u] + a2[v]); softmax over sources u.
        e = a1_ref[hd:hd + 1, :] + a2_ref[:, hd:hd + 1]       # (TV, N) f32
        e = jnp.where(e > 0, e, alpha * e)
        e = jnp.where(edge, e, NEG_INF)
        m = jnp.max(e, axis=-1, keepdims=True)                # (TV, 1)
        p = jnp.exp(e - m)                                    # non-edges underflow to 0
        denom = jnp.sum(p, axis=-1, keepdims=True)            # (TV, 1)
        # Aggregate neighbor features on the MXU in bf16, normalize afterwards.
        agg = jnp.dot(p.astype(jnp.bfloat16), ft_ref[:, hd * D:(hd + 1) * D],
                      preferred_element_type=jnp.float32)     # (TV, D)
        agg = agg * pl.reciprocal(denom, approx=True)
        outs.append(jnp.maximum(res_ref[:, hd * D:(hd + 1) * D] + agg, 0.0))
    o_ref[...] = jnp.concatenate(outs, axis=-1)               # (TV, H*D) lane-dense


# --------------------------------------------------------------------------
# Wrapper
# --------------------------------------------------------------------------
def graph_attention(h, adj, fc_w, res_w, attn_l, attn_r, num_heads, alpha=0.2,
                    *, node_tile=128):
    """h: (N, H*in_dim); adj[u, v] = 1 iff edge u->v (every real node must have
    a self loop); fc_w / res_w: (out_dim, in_dim) (PyTorch Linear layout);
    attn_l / attn_r: (1, H, out_dim).  Returns (N, H*out_dim)."""
    N = h.shape[0]
    H = num_heads
    out_dim, in_dim = fc_w.shape
    assert h.shape[1] == H * in_dim
    hd_in, hd_out = H * in_dim, H * out_dim

    # Node tile: multiple of 16 (bf16 sublane packing); pad N up to a multiple.
    tile = min(node_tile, ((N + 15) // 16) * 16)
    tile = ((tile + 15) // 16) * 16
    n_pad = ((N + tile - 1) // tile) * tile
    pad_n = n_pad - N

    # --- host-side prep (tiny, one-time) -----------------------------------
    h_p = jnp.pad(h, ((0, pad_n), (0, 0))) if pad_n else h

    # adj_vu[v, u] = adj[u, v]; bf16 halves the streamed adjacency traffic.
    adj_vu = jnp.pad(adj.astype(jnp.bfloat16).T, ((0, pad_n), (0, pad_n)))
    if pad_n:
        # Padded destination rows get a dummy self loop so their softmax row
        # is non-empty (output rows >= N are discarded anyway).
        adj_vu = adj_vu + jnp.diag((jnp.arange(n_pad) >= N).astype(jnp.bfloat16))

    # Fused block-diagonal weight: columns [0, H*Dout) -> fc, rest -> res_fc,
    # head-major within each half so kernel outputs land lane-dense.
    wfc_t, wres_t = fc_w.T, res_w.T                            # (Din, Dout)
    eyeh = jnp.eye(H, dtype=jnp.float32)
    w_ft = jnp.einsum('gh,de->gdhe', eyeh, wfc_t).reshape(hd_in, hd_out)
    w_rs = jnp.einsum('gh,de->gdhe', eyeh, wres_t).reshape(hd_in, hd_out)
    w_big = jnp.concatenate([w_ft, w_rs], axis=-1).astype(jnp.bfloat16)

    al = attn_l.reshape(H, out_dim).astype(jnp.float32)
    ar = attn_r.reshape(H, out_dim).astype(jnp.float32)

    cparams = pltpu.CompilerParams(dimension_semantics=("parallel",),
                                   vmem_limit_bytes=VMEM_LIMIT)

    # --- kernel 1: projections + logit terms -------------------------------
    grid1 = (n_pad // tile,)
    ft, res, a12 = pl.pallas_call(
        partial(_proj_kernel, num_heads=H, out_dim=out_dim),
        grid=grid1,
        in_specs=[
            pl.BlockSpec((tile, hd_in), lambda i: (i, 0)),         # h tile
            pl.BlockSpec((hd_in, 2 * hd_out), lambda i: (0, 0)),   # fused weight
            pl.BlockSpec((H, out_dim), lambda i: (0, 0)),          # attn_l
            pl.BlockSpec((H, out_dim), lambda i: (0, 0)),          # attn_r
        ],
        out_specs=[
            pl.BlockSpec((tile, hd_out), lambda i: (i, 0)),        # ft (bf16)
            pl.BlockSpec((tile, hd_out), lambda i: (i, 0)),        # res (f32)
            pl.BlockSpec((tile, 2 * H), lambda i: (i, 0)),         # [a1 | a2]
        ],
        out_shape=[
            jax.ShapeDtypeStruct((n_pad, hd_out), jnp.bfloat16),
            jax.ShapeDtypeStruct((n_pad, hd_out), jnp.float32),
            jax.ShapeDtypeStruct((n_pad, 2 * H), jnp.float32),
        ],
        compiler_params=cparams,
    )(h_p, w_big, al, ar)

    a1_hn = a12[:, :H].T        # (H, n_pad): source terms as rows (tiny)
    a2_nh = a12[:, H:]          # (n_pad, H): dest terms, streamed per tile

    # --- kernel 2: masked softmax + aggregation, tiled over dst nodes -------
    grid2 = (n_pad // tile,)
    out = pl.pallas_call(
        partial(_attn_kernel, num_heads=H, out_dim=out_dim, alpha=alpha),
        grid=grid2,
        in_specs=[
            pl.BlockSpec((tile, n_pad), lambda i: (i, 0)),     # adj rows (bf16)
            pl.BlockSpec((n_pad, hd_out), lambda i: (0, 0)),   # ft, VMEM-resident
            pl.BlockSpec((H, n_pad), lambda i: (0, 0)),        # a1, resident
            pl.BlockSpec((tile, H), lambda i: (i, 0)),         # a2 dst tile
            pl.BlockSpec((tile, hd_out), lambda i: (i, 0)),    # res dst tile
        ],
        out_specs=pl.BlockSpec((tile, hd_out), lambda i: (i, 0)),
        out_shape=jax.ShapeDtypeStruct((n_pad, hd_out), jnp.float32),
        compiler_params=cparams,
    )(adj_vu, ft, a1_hn, a2_nh, res)

    return out[:N]


# --------------------------------------------------------------------------
# Pure-JAX reference (same dense-graph semantics and same bf16-at-MXU
# precision choices as the kernel: bf16 matmul inputs, f32 accumulation,
# normalization after the aggregation matmul).
# --------------------------------------------------------------------------
def reference(h, adj, fc_w, res_w, attn_l, attn_r, num_heads, alpha=0.2):
    N = h.shape[0]
    H = num_heads
    out_dim, in_dim = fc_w.shape
    hr = h.reshape(N, H, in_dim).astype(jnp.bfloat16)
    ft = jnp.einsum('nhd,ed->nhe', hr, fc_w.astype(jnp.bfloat16),
                    preferred_element_type=jnp.float32)        # (N, H, D)
    resval = jnp.einsum('nhd,ed->nhe', hr, res_w.astype(jnp.bfloat16),
                        preferred_element_type=jnp.float32)
    a1 = jnp.sum(ft * attn_l, -1)                              # (N, H) src
    a2 = jnp.sum(ft * attn_r, -1)                              # (N, H) dst
    e = a1[:, None, :] + a2[None, :, :]                        # (u, v, H)
    e = jnp.where(e > 0, e, alpha * e)
    e = jnp.where(adj[:, :, None] > 0, e, NEG_INF)
    m = jnp.max(e, axis=0, keepdims=True)
    p = jnp.exp(e - m)
    denom = jnp.sum(p, axis=0)                                 # (v, H)
    agg = jnp.einsum('uvh,uhd->vhd', p.astype(jnp.bfloat16), ft.astype(jnp.bfloat16),
                     preferred_element_type=jnp.float32)       # (v, H, D)
    agg = agg / denom[:, :, None]
    return jax.nn.relu((resval + agg).reshape(N, H * out_dim))


if __name__ == "__main__":
    # Small shapes consistent with the module (per-head feature dim == fc in-dim).
    N, H, in_dim, out_dim, alpha = 200, 4, 32, 32, 0.2

    key = jax.random.PRNGKey(0)
    k = jax.random.split(key, 6)

    h = jax.random.normal(k[0], (N, H * in_dim), jnp.float32)

    # Deterministic xavier_normal_(gain=1.414)-style init.
    std_fc = 1.414 * (2.0 / (in_dim + out_dim)) ** 0.5
    fc_w = std_fc * jax.random.normal(k[1], (out_dim, in_dim), jnp.float32)
    res_w = std_fc * jax.random.normal(k[2], (out_dim, in_dim), jnp.float32)
    std_a = 1.414 * (2.0 / (H * out_dim + out_dim)) ** 0.5
    attn_l = std_a * jax.random.normal(k[3], (1, H, out_dim), jnp.float32)
    attn_r = std_a * jax.random.normal(k[4], (1, H, out_dim), jnp.float32)

    # Sparse adjacency with self loops (adj[u, v] = 1 iff edge u -> v).
    adj = (jax.random.uniform(k[5], (N, N)) < 0.15).astype(jnp.float32)
    adj = jnp.maximum(adj, jnp.eye(N, dtype=jnp.float32))

    out = jax.block_until_ready(
        graph_attention(h, adj, fc_w, res_w, attn_l, attn_r, H, alpha,
                        node_tile=64))

    ref = reference(h, adj, fc_w, res_w, attn_l, attn_r, H, alpha)
    assert out.shape == (N, H * out_dim)
    err = float(jnp.max(jnp.abs(out - ref)))
    # Tolerance reflects bf16 MXU inputs + approximate (EUP) reciprocal.
    assert jnp.allclose(out, ref, atol=5e-2, rtol=5e-2), \
        f"mismatch vs reference (max abs err {err})"

    print("KERNEL_OK")
</pallas_src>

<mosaic_0001>
module attributes {stable_mosaic.version = 11 : i64} {
  func.func @_proj_kernel(%arg0: i32, %arg1: memref<64x128xf32, #tpu.memory_space<vmem>>, %arg2: memref<128x256xbf16, #tpu.memory_space<vmem>>, %arg3: memref<4x32xf32, #tpu.memory_space<vmem>>, %arg4: memref<4x32xf32, #tpu.memory_space<vmem>>, %arg5: memref<64x128xbf16, #tpu.memory_space<vmem>>, %arg6: memref<64x128xf32, #tpu.memory_space<vmem>>, %arg7: memref<64x8xf32, #tpu.memory_space<vmem>>) attributes {dimension_semantics = [#tpu.dimension_semantics<parallel>], iteration_bounds = array<i64: 4>, scalar_prefetch = 0 : i64, scratch_operands = 0 : i64, tpu.core_type = #tpu.core_type<tc>, window_params = [{transform_indices = @transform_0, window_bounds = array<i64: 64, 128>}, {pipeline_mode = #tpu.pipeline_mode<synchronous>, transform_indices = @transform_1, window_bounds = array<i64: 128, 256>}, {pipeline_mode = #tpu.pipeline_mode<synchronous>, transform_indices = @transform_2, window_bounds = array<i64: 4, 32>}, {pipeline_mode = #tpu.pipeline_mode<synchronous>, transform_indices = @transform_3, window_bounds = array<i64: 4, 32>}, {transform_indices = @transform_4, window_bounds = array<i64: 64, 128>}, {transform_indices = @transform_5, window_bounds = array<i64: 64, 128>}, {transform_indices = @transform_6, window_bounds = array<i64: 64, 8>}]} {
    %c0 = arith.constant 0 : index
    %c0_0 = arith.constant 0 : index
    %0 = vector.load %arg1[%c0, %c0_0] : memref<64x128xf32, #tpu.memory_space<vmem>>, vector<64x128xf32>
    %1 = arith.truncf %0 : vector<64x128xf32> to vector<64x128xbf16>
    %c0_1 = arith.constant 0 : index
    %c0_2 = arith.constant 0 : index
    %2 = vector.load %arg2[%c0_1, %c0_2] : memref<128x256xbf16, #tpu.memory_space<vmem>>, vector<128x256xbf16>
    %cst = arith.constant dense<0.000000e+00> : vector<64x256xf32>
    %3 = tpu.matmul %1, %2, %cst {dimension_numbers = #tpu.dot_dimension_numbers<[1], [0], [0], [1], [0, 0, 1, 1], [], []>} : vector<64x128xbf16>, vector<128x256xbf16>, vector<64x256xf32> -> vector<64x256xf32>
    %4 = vector.extract_strided_slice %3 {offsets = [0, 0], sizes = [64, 128], strides = [1, 1]} : vector<64x256xf32> to vector<64x128xf32>
    %5 = arith.truncf %4 : vector<64x128xf32> to vector<64x128xbf16>
    %c0_3 = arith.constant 0 : index
    %c0_4 = arith.constant 0 : index
    %6 = vector.load %arg5[%c0_3, %c0_4] : memref<64x128xbf16, #tpu.memory_space<vmem>>, vector<64x128xbf16>
    tpu.vector_store %arg5[%c0_3, %c0_4], %5 {strides = array<i32>} : memref<64x128xbf16, #tpu.memory_space<vmem>>, vector<64x128xbf16>,
    %7 = vector.extract_strided_slice %3 {offsets = [0, 128], sizes = [64, 128], strides = [1, 1]} : vector<64x256xf32> to vector<64x128xf32>
    %c0_5 = arith.constant 0 : index
    %c0_6 = arith.constant 0 : index
    %8 = vector.load %arg6[%c0_5, %c0_6] : memref<64x128xf32, #tpu.memory_space<vmem>>, vector<64x128xf32>
    tpu.vector_store %arg6[%c0_5, %c0_6], %7 {strides = array<i32>} : memref<64x128xf32, #tpu.memory_space<vmem>>, vector<64x128xf32>,
    %9 = vector.extract_strided_slice %4 {offsets = [0, 0], sizes = [64, 32], strides = [1, 1]} : vector<64x128xf32> to vector<64x32xf32>
    %c0_7 = arith.constant 0 : index
    %c0_8 = arith.constant 0 : index
    %10 = vector.load %arg3[%c0_7, %c0_8] : memref<4x32xf32, #tpu.memory_space<vmem>>, vector<1x32xf32>
    %11 = vector.broadcast %10 : vector<1x32xf32> to vector<64x32xf32>
    %12 = arith.mulf %9, %11 : vector<64x32xf32>
    %cst_9 = arith.constant dense<0.000000e+00> : vector<64xf32>
    %13 = vector.multi_reduction <add>, %12, %cst_9 [1] : vector<64x32xf32> to vector<64xf32>
    %14 = vector.shape_cast %13 : vector<64xf32> to vector<64x1xf32>
    %c0_10 = arith.constant 0 : index
    %c0_11 = arith.constant 0 : index
    %15 = vector.load %arg4[%c0_10, %c0_11] : memref<4x32xf32, #tpu.memory_space<vmem>>, vector<1x32xf32>
    %16 = vector.broadcast %15 : vector<1x32xf32> to vector<64x32xf32>
    %17 = arith.mulf %9, %16 : vector<64x32xf32>
    %cst_12 = arith.constant dense<0.000000e+00> : vector<64xf32>
    %18 = vector.multi_reduction <add>, %17, %cst_12 [1] : vector<64x32xf32> to vector<64xf32>
    %19 = vector.shape_cast %18 : vector<64xf32> to vector<64x1xf32>
    %20 = vector.extract_strided_slice %4 {offsets = [0, 32], sizes = [64, 32], strides = [1, 1]} : vector<64x128xf32> to vector<64x32xf32>
    %c1 = arith.constant 1 : index
    %c0_13 = arith.constant 0 : index
    %21 = vector.load %arg3[%c1, %c0_13] : memref<4x32xf32, #tpu.memory_space<vmem>>, vector<1x32xf32>
    %22 = vector.broadcast %21 : vector<1x32xf32> to vector<64x32xf32>
    %23 = arith.mulf %20, %22 : vector<64x32xf32>
    %cst_14 = arith.constant dense<0.000000e+00> : vector<64xf32>
    %24 = vector.multi_reduction <add>, %23, %cst_14 [1] : vector<64x32xf32> to vector<64xf32>
    %25 = vector.shape_cast %24 : vector<64xf32> to vector<64x1xf32>
    %c1_15 = arith.constant 1 : index
    %c0_16 = arith.constant 0 : index
    %26 = vector.load %arg4[%c1_15, %c0_16] : memref<4x32xf32, #tpu.memory_space<vmem>>, vector<1x32xf32>
    %27 = vector.broadcast %26 : vector<1x32xf32> to vector<64x32xf32>
    %28 = arith.mulf %20, %27 : vector<64x32xf32>
    %cst_17 = arith.constant dense<0.000000e+00> : vector<64xf32>
    %29 = vector.multi_reduction <add>, %28, %cst_17 [1] : vector<64x32xf32> to vector<64xf32>
    %30 = vector.shape_cast %29 : vector<64xf32> to vector<64x1xf32>
    %31 = vector.extract_strided_slice %4 {offsets = [0, 64], sizes = [64, 32], strides = [1, 1]} : vector<64x128xf32> to vector<64x32xf32>
    %c2 = arith.constant 2 : index
    %c0_18 = arith.constant 0 : index
    %32 = vector.load %arg3[%c2, %c0_18] : memref<4x32xf32, #tpu.memory_space<vmem>>, vector<1x32xf32>
    %33 = vector.broadcast %32 : vector<1x32xf32> to vector<64x32xf32>
    %34 = arith.mulf %31, %33 : vector<64x32xf32>
    %cst_19 = arith.constant dense<0.000000e+00> : vector<64xf32>
    %35 = vector.multi_reduction <add>, %34, %cst_19 [1] : vector<64x32xf32> to vector<64xf32>
    %36 = vector.shape_cast %35 : vector<64xf32> to vector<64x1xf32>
    %c2_20 = arith.constant 2 : index
    %c0_21 = arith.constant 0 : index
    %37 = vector.load %arg4[%c2_20, %c0_21] : memref<4x32xf32, #tpu.memory_space<vmem>>, vector<1x32xf32>
    %38 = vector.broadcast %37 : vector<1x32xf32> to vector<64x32xf32>
    %39 = arith.mulf %31, %38 : vector<64x32xf32>
    %cst_22 = arith.constant dense<0.000000e+00> : vector<64xf32>
    %40 = vector.multi_reduction <add>, %39, %cst_22 [1] : vector<64x32xf32> to vector<64xf32>
    %41 = vector.shape_cast %40 : vector<64xf32> to vector<64x1xf32>
    %42 = vector.extract_strided_slice %4 {offsets = [0, 96], sizes = [64, 32], strides = [1, 1]} : vector<64x128xf32> to vector<64x32xf32>
    %c3 = arith.constant 3 : index
    %c0_23 = arith.constant 0 : index
    %43 = vector.load %arg3[%c3, %c0_23] : memref<4x32xf32, #tpu.memory_space<vmem>>, vector<1x32xf32>
    %44 = vector.broadcast %43 : vector<1x32xf32> to vector<64x32xf32>
    %45 = arith.mulf %42, %44 : vector<64x32xf32>
    %cst_24 = arith.constant dense<0.000000e+00> : vector<64xf32>
    %46 = vector.multi_reduction <add>, %45, %cst_24 [1] : vector<64x32xf32> to vector<64xf32>
    %47 = vector.shape_cast %46 : vector<64xf32> to vector<64x1xf32>
    %c3_25 = arith.constant 3 : index
    %c0_26 = arith.constant 0 : index
    %48 = vector.load %arg4[%c3_25, %c0_26] : memref<4x32xf32, #tpu.memory_space<vmem>>, vector<1x32xf32>
    %49 = vector.broadcast %48 : vector<1x32xf32> to vector<64x32xf32>
    %50 = arith.mulf %42, %49 : vector<64x32xf32>
    %cst_27 = arith.constant dense<0.000000e+00> : vector<64xf32>
    %51 = vector.multi_reduction <add>, %50, %cst_27 [1] : vector<64x32xf32> to vector<64xf32>
    %52 = vector.shape_cast %51 : vector<64xf32> to vector<64x1xf32>
    %53 = tpu.concatenate %14, %25, %36, %47, %19, %30, %41, %52 in 1 : vector<64x1xf32>, vector<64x1xf32>, vector<64x1xf32>, vector<64x1xf32>, vector<64x1xf32>, vector<64x1xf32>, vector<64x1xf32>, vector<64x1xf32> -> vector<64x8xf32>
    %c0_28 = arith.constant 0 : index
    %c0_29 = arith.constant 0 : index
    %54 = vector.load %arg7[%c0_28, %c0_29] : memref<64x8xf32, #tpu.memory_space<vmem>>, vector<64x8xf32>
    tpu.vector_store %arg7[%c0_28, %c0_29], %53 {strides = array<i32>} : memref<64x8xf32, #tpu.memory_space<vmem>>, vector<64x8xf32>,
    return
  }
  func.func @transform_0(%arg0: i32) -> (i32, i32) {
    %c0_i32 = arith.constant 0 : i32
    %c0_i32_0 = arith.constant 0 : i32
    return %arg0, %c0_i32 : i32, i32
  }
  func.func @transform_1(%arg0: i32) -> (i32, i32) {
    %c0_i32 = arith.constant 0 : i32
    %c0_i32_0 = arith.constant 0 : i32
    %c0_i32_1 = arith.constant 0 : i32
    return %c0_i32, %c0_i32_0 : i32, i32
  }
  func.func @transform_2(%arg0: i32) -> (i32, i32) {
    %c0_i32 = arith.constant 0 : i32
    %c0_i32_0 = arith.constant 0 : i32
    %c0_i32_1 = arith.constant 0 : i32
    return %c0_i32, %c0_i32_0 : i32, i32
  }
  func.func @transform_3(%arg0: i32) -> (i32, i32) {
    %c0_i32 = arith.constant 0 : i32
    %c0_i32_0 = arith.constant 0 : i32
    %c0_i32_1 = arith.constant 0 : i32
    return %c0_i32, %c0_i32_0 : i32, i32
  }
  func.func @transform_4(%arg0: i32) -> (i32, i32) {
    %c0_i32 = arith.constant 0 : i32
    %c0_i32_0 = arith.constant 0 : i32
    return %arg0, %c0_i32 : i32, i32
  }
  func.func @transform_5(%arg0: i32) -> (i32, i32) {
    %c0_i32 = arith.constant 0 : i32
    %c0_i32_0 = arith.constant 0 : i32
    return %arg0, %c0_i32 : i32, i32
  }
  func.func @transform_6(%arg0: i32) -> (i32, i32) {
    %c0_i32 = arith.constant 0 : i32
    %c0_i32_0 = arith.constant 0 : i32
    return %arg0, %c0_i32 : i32, i32
  }
}

</mosaic_0001>

<bundles_post_ra>
// kernel: tpu_custom_call.1
= control target key start
LH: loop header
LB: loop body
LE: loop exit
PB: predicated region body
PF: predicated region fallthrough
CT: control target
= control target key end

     0   :  { %12 = vsyncpa [#allocation3], 0  ;;  %s2571_s0 = inlined_call_operand.hbm [shape: f32[256,128], index: 0, kind: input, shape index: {}]   ;;  %s2572_s1 = inlined_call_operand.hbm [shape: bf16[128,256], index: 1, kind: input, shape index: {}]   ;;  %s2573_s2 = inlined_call_operand.hbm [shape: f32[4,32], index: 2, kind: input, shape index: {}]   ;;  %s2574_s3 = inlined_call_operand.vmem [shape: f32[4,32], index: 3, kind: input, shape index: {}]   ;;  %s2575_s4 = inlined_call_operand.hbm [shape: bf16[256,128], index: 4, kind: output, shape index: {0}]   ;;  %s2576_s5 = inlined_call_operand.hbm [shape: f32[256,128], index: 5, kind: output, shape index: {1}]   ;;  %s2577_s6 = inlined_call_operand.vmem [shape: f32[256,8], index: 6, kind: output, shape index: {2}]  }
   0x1   :  { %14 = vsyncpa [#allocation3 + $0x1], 0 }
   0x2   :  { %15 = vsyncpa [#allocation6], 0 }
   0x3   :  { %16 = vsyncpa [#allocation4], 0 }
   0x4   :  { %18 = vsyncpa [#allocation4 + $0x1], 0 }
   0x5   :  { %19 = vsyncpa [#allocation10], 0 }
   0x6   :  { %21 = vsyncpa [#allocation10 + $0x1], 0  ;;  %s1772_s21 = smov 0   ;;  %s1774_s22 = smov 0  }
   0x7   :  { %s1776_s23 = smov 0   ;;  %s1778_s24 = smov 0  }
   0x8 LB: > { %s1793_s25 = sadd.s32 4294967295, %s1721_s24   ;;  %s1332_s26 = sadd.s32 4294967294, %s1721_s24   ;;  %s1721_s24 = sphi %s1778_s24, %s2601_s24   ;;  %s1717_s23 = sphi %s1776_s23, %s2600_s23   ;;  %s1713_s22 = sphi %s1774_s22, %s2599_s22   ;;  %s1709_s21 = sphi %s1772_s21, %s2598_s21  }
   0x9   : > { %p47_p0 = scmp.ne.s32.totalorder %s1713_s22, %s1709_s21  ;;  %p2578_p1 = scmp.eq.s32.totalorder %s1793_s25, 0 }
   0xa   : > { %p134_p2 = scmp.eq.s32.totalorder %s1793_s25, 3  ;;  %p140_p3 = scmp.eq.s32.totalorder %s1332_s26, 3 }
   0xb   : > { %p1802_p4 = por %p2578_p1, %p47_p0  ;;  %p1333_p5 = scmp.ge.s32.totalorder %s1721_s24, 1 }
   0xc   : > { %p1807_p6 = por %p140_p3, %p47_p0  ;;  %p199_p7 = scmp.lt.s32.totalorder %s1721_s24, 5 }
   0xd   : > { %s2584_s27 = scalar_select %p1802_p4, 1, 0 }
   0xe   : > { %s2585_s28 = scalar_select %p1807_p6, 1, 0 }
   0xf   : > { %p1812_p8 = pnand %p1333_p5, %p199_p7  ;;  %s1723_s30 = smov [#allocation5]  }
  0x10   : > { %s211_s7 = sshll.u32 %s1723_s30, 4  ;;  %s1724_s9 = smov [#allocation7]   ;;  %s212_s7 = int_to_ptr.vmem [resolvable:$true] %s211_s7 }
  0x11   : > { %s2586_s29 = scalar_select %p1812_p8, 1, 0 }
  0x12   : > { %p1452_p9 = pneg %p1812_p8  ;;  %s225_s10 = sshll.u32 %s1724_s9, 4  ;;  %s226_s10 = int_to_ptr.vmem [resolvable:$true] %s225_s10 }
  0x13   : > { %s1554_s11 = scalar_lea.vmem %s212_s7, 2048  ;;  %p1562_p3 = scmp.lt.s32.totalorder %s212_s7, %s212_s7 }
  0x14   : > { %p1820_p10 = pnand %p1452_p9, %p2578_p1  ;;  %p1555_p12 = scmp.ne.s32.totalorder %s212_s7, %s1554_s11 }
  0x15   : > { %p1563_p5 = scmp.lt.s32.totalorder %s1554_s11, %s1554_s11 }
  0x16   : > { %p1545_p11 = pneg %p1820_p10 }
  0x17   : > { %p1564_p7 = por %p1563_p5, %p1562_p3 }
  0x18   : > { %p1557_p13 = pnand %p1555_p12, %p1545_p11 }
  0x1a   : > { %p1558_p0 = pneg %p1557_p13 }
  0x1c   : > { %p1565_p9 = pnand %p1564_p7, %p1558_p0 }
  0x1e   : > { %1568 = shalt.err (!%p1565_p9)
}
  0x1f   : > { %s2579_s12 = smov 128   ;;  %s2580_s13 = smov 8  }
  0x20   : > { %1455 = dma.hbm_to_vmem [thread:$0]  (!%p1820_p10), %s2572_s1, 2048, %s212_s7, [#allocation6], %s2579_s12, %s2579_s12, %s2580_s13  }
  0x21   : > { %s1580_s16 = scalar_lea.vmem %s226_s10, 64  ;;  %p1588_p0 = scmp.lt.s32.totalorder %s226_s10, %s226_s10 }
  0x22   : > { %p1581_p12 = scmp.ne.s32.totalorder %s226_s10, %s1580_s16  ;;  %p1589_p5 = scmp.lt.s32.totalorder %s1580_s16, %s1580_s16 }
  0x24   : > { %p1583_p13 = pnand %p1581_p12, %p1545_p11  ;;  %p1590_p7 = por %p1589_p5, %p1588_p0 }
  0x26   : > { %p1584_p3 = pneg %p1583_p13 }
  0x28   : > { %p1591_p9 = pnand %p1590_p7, %p1584_p3 }
  0x2a   : > { %1594 = shalt.err (!%p1591_p9)
}
  0x2b   : > { %1458 = dma.hbm_to_vmem [thread:$0]  (!%p1820_p10), %s2573_s2, 64, %s226_s10, [#allocation6]  }
  0x2c   : > { %s1846_s19 = sadd.s32 1, %s1721_s24   ;;  %s34_s20 = sadd.s32 1, %s1717_s23 }
  0x2d   : > { %s31_s26 = ssub.s32 %s1721_s24, %s1846_s19  ;;  %p41_p11 = scmp.ne.s32.totalorder %s1717_s23, %s1713_s22 }
  0x2e   : > { %p32_p12 = scmp.eq.s32.totalorder %s31_s26, 0  ;;  %p42_p13 = scmp.eq.s32.totalorder %s1721_s24, 0 }
  0x2f   : > { %p1856_p3 = por %p134_p2, %p41_p11  ;;  %p1472_p0 = scmp.lt.s32.totalorder %s1721_s24, 4 }
  0x30   : > { %s1862_s7 = scalar_select %p32_p12, %s1717_s23, %s34_s20  }
  0x31   : > { %s2588_s30 = scalar_select %p1856_p3, 1, 0 }
  0x32   : > { %p43_p5 = por %p42_p13, %p41_p11  ;;  %s239_s8 = sand.u32 1, %s1717_s23  }
  0x33   : > { %s1337_s9 = sshll.u32 %s239_s8, 6  ;;  %s1388_s10 = sshll.u32 %s1721_s24, 10 }
  0x34   : > { %s1869_s15 = scalar_lea.hbm %s2571_s0, %s1388_s10  ;;  %s243_s16 = scalar_lea.vmem [#allocation2], %s1337_s9 }
  0x35   : > { %s250_s17 = sshll.u32 %s243_s16, 4  ;;  %p1873_p2 = pnand %p1472_p0, %p43_p5  ;;  %s1871_s17 = int_to_ptr.vmem [resolvable:$true] %s250_s17 }
  0x36   : > { %s1877_s20 = scalar_lea.sflag [#allocation3], %s239_s8  ;;  %s1595_s26 = scalar_lea.hbm %s1869_s15, 1024 }
  0x37   : > { %p1596_p10 = scmp.ne.s32.totalorder %s1869_s15, %s1595_s26  ;;  %p1597_p7 = pneg %p1873_p2 }
  0x38   : > { %s1600_s9 = scalar_lea.hbm %s2571_s0, 4096  ;;  %p1601_p12 = scmp.lt.s32.totalorder %s1869_s15, %s2571_s0 }
  0x39   : > { %p1598_p9 = pnand %p1597_p7, %p1596_p10  ;;  %p1602_p13 = scmp.lt.s32.totalorder %s1600_s9, %s1595_s26 }
  0x3b   : > { %p1599_p11 = pneg %p1598_p9  ;;  %p1603_p0 = por %p1602_p13, %p1601_p12 }
  0x3d   : > { %p1604_p5 = pnand %p1603_p0, %p1599_p11 }
  0x3f   : > { %1607 = shalt.err (!%p1604_p5)
}
  0x40   : > { %s1608_s8 = scalar_lea.vmem %s1871_s17, 1024  ;;  %s1727_s12 = smov [#allocation2]  }
  0x41   : > { %p1609_p1 = scmp.ne.s32.totalorder %s1871_s17, %s1608_s8  ;;  %s1613_s13 = sshll.u32 %s1727_s12, 4  ;;  %s1614_s13 = int_to_ptr.vmem [resolvable:$false] %s1613_s13 }
  0x42   : > { %s1615_s10 = scalar_lea.vmem %s1614_s13, 2048  ;;  %p1616_p9 = scmp.lt.s32.totalorder %s1871_s17, %s1614_s13 }
  0x43   : > { %p1611_p6 = pnand %p1609_p1, %p1597_p7  ;;  %p1617_p3 = scmp.lt.s32.totalorder %s1615_s10, %s1608_s8 }
  0x45   : > { %p1612_p10 = pneg %p1611_p6  ;;  %p1618_p4 = por %p1617_p3, %p1616_p9 }
  0x47   : > { %p1619_p8 = pnand %p1618_p4, %p1612_p10 }
  0x49   : > { %1622 = shalt.err (!%p1619_p8)
}
  0x4a   : > { %s2590_s26 = smov 8   ;;  %s2591_s11 = smov 128  }
  0x4b   : > { %1462 = dma.hbm_to_vmem [thread:$0]  (!%p1873_p2), %s1869_s15, 1024, %s1871_s17, %s1877_s20, %s2591_s11, %s2591_s11, %s2590_s26  }
  0x4c   : > { %p2592_p1 = scmp.ne.s32.totalorder %s2586_s29, 0 }
  0x4d   : > { %s1904_s12 = sand.u32 (!%p2592_p1), 1, %s1713_s22   ;;  %p2593_p4 = scmp.ne.s32.totalorder (!%p2592_p1), %s2584_s27, 0 }
  0x4e   : > { %262 = sbr.rel (%p2592_p1) target bundleno = 857 (0x359), region = 36  ;;  %s1341_s13 = sshll.u32 (!%p2592_p1), %s1904_s12, 6 }
  0x4f   : > { %s265_s9 = scalar_lea.sflag (!%p2592_p1), [#allocation3], %s1904_s12  ;;  %s1910_s18 = scalar_lea.vmem (!%p2592_p1), [#allocation2], %s1341_s13 }
  0x53   : > { %1692 = dma.done.wait (%p2593_p4), %s265_s9, 1024  }
  0x54   : > { %1694 = vsyncadd (%p2593_p4), %s265_s9, 4294966272  ;;  %p2594_p6 = scmp.eq.s32.totalorder %s1793_s25, 0 }
  0x56   : > { %1696 = dma.done.wait (%p2594_p6), [#allocation6], 2112   ;;  %p2595_p8 = pmov %p2594_p6 }
  0x57   : > { %v1728_v0 = vmov 0   ;;  %v1519_v1 = vld [vmem:[#allocation5 + $0x74] ss:$8 sps:$4 sm:$0xff]   ;;  %v1521_v2 = vld [vmem:[#allocation5 + $0x70] ss:$8 sps:$4 sm:$0xff]   ;;  %s1729_s27 = smov 32  }
  0x58   : > { %1698 = vsyncadd (%p2595_p8), [#allocation6], 4294965184  ;;  %465 = vmatprep.mubr.bf16.mxu0 %v1728_v0  ;;  %485 = vmatprep.mubr.bf16.mxu1 %v1728_v0  ;;  %v1522_v3 = vld [vmem:[#allocation5 + $0x64] ss:$8 sps:$4 sm:$0xff]   ;;  %v1524_v4 = vld [vmem:[#allocation5 + $0x60] ss:$8 sps:$4 sm:$0xff]  }
  0x59   : > { %433 = vmatprep.subr.bf16.mxu0 %v1519_v1  ;;  %1422 = vmatprep.subr.bf16.mxu1 %v1519_v1  ;;  %v1525_v5 = vld [vmem:[#allocation5 + $0x54] ss:$8 sps:$4 sm:$0xff]   ;;  %v1527_v6 = vld [vmem:[#allocation5 + $0x50] ss:$8 sps:$4 sm:$0xff]   ;;  %v1528_v7 = vld [vmem:[#allocation5 + $0x44] ss:$8 sps:$4 sm:$0xff]  }
  0x5a   : > { %434 = vmatpush1.bf16.msra.mxu0 %v1521_v2  ;;  %1430 = vmatpush1.bf16.msra.mxu1 %v1521_v2  ;;  %v1530_v8 = vld [vmem:[#allocation5 + $0x40] ss:$8 sps:$4 sm:$0xff]   ;;  %v1531_v9 = vld [vmem:[#allocation5 + $0x34] ss:$8 sps:$4 sm:$0xff]   ;;  %v1533_v12 = vld [vmem:[#allocation5 + $0x30] ss:$8 sps:$4 sm:$0xff]  }
  0x5b   : > { %435 = vmatprep.subr.bf16.mxu0 %v1522_v3  ;;  %1423 = vmatprep.subr.bf16.mxu1 %v1522_v3  ;;  %v1374_v10 = vld [vmem:[#allocation7 + $0x1] ss:$0 sm:$0xff]  ;;  %v1376_v13 = vld [vmem:[#allocation7 + $0x2] ss:$0 sm:$0xff]  ;;  %v1534_v14 = vld [vmem:[#allocation5 + $0x24] ss:$8 sps:$4 sm:$0xff]  }
  0x5c   : > { %635 = vrot.lane.b32.xlu0 %v1374_v10, %s1729_s27  ;;  %v1375_v11 = vld [vmem:[%s2574_s3 + $0x1] ss:$0 sm:$0xff]  ;;  %s1730_s17 = smov 64   ;;  %v1378_v16 = vld [vmem:[#allocation7 + $0x3] ss:$0 sm:$0xff]  ;;  %s1731_s20 = smov 96  }
  0x5d   : > { %708 = vrot.lane.b32.xlu1 %v1375_v11, %s1729_s27  ;;  %v1536_v15 = vld [vmem:[#allocation5 + $0x20] ss:$8 sps:$4 sm:$0xff]   ;;  %v1537_v17 = vld [vmem:[#allocation5 + $0x14] ss:$8 sps:$4 sm:$0xff]   ;;  %v1539_v18 = vld [vmem:[#allocation5 + $0x10] ss:$8 sps:$4 sm:$0xff]  }
  0x5e   : > { %436 = vmatpush1.bf16.msra.mxu0 %v1524_v4  ;;  %1431 = vmatpush1.bf16.msra.mxu1 %v1524_v4  ;;  %v1377_v19 = vld [vmem:[%s2574_s3 + $0x2] ss:$0 sm:$0xff]  ;;  %v1540_v20 = vld [vmem:[#allocation5 + $0x4] ss:$8 sps:$4 sm:$0xff]   ;;  %v1379_v26 = vld [vmem:[%s2574_s3 + $0x3] ss:$0 sm:$0xff] }
  0x5f   : > { %437 = vmatprep.subr.bf16.mxu0 %v1525_v5  ;;  %1424 = vmatprep.subr.bf16.mxu1 %v1525_v5  ;;  %v1542_v21 = vld [vmem:[#allocation5] ss:$8 sps:$4 sm:$0xff]   ;;  %v327_v29 = vld [vmem:[%s1910_s18 + $0x10] sm:$0xff]  ;;  %v328_v30 = vld [vmem:[%s1910_s18 + $0x18] sm:$0xff]  ;;  %s1344_s26 = sshll.u32 %s1904_s12, 5  ;;  %s1966_s11 = scalar_lea.vmem [#allocation9], %s1341_s13 }
  0x60   : > { %781 = vrot.lane.b32.xlu0 %v1376_v13, %s1730_s17  ;;  %v325_v22 = vld [vmem:[%s1910_s18] sm:$0xff]  ;;  %v326_v23 = vld [vmem:[%s1910_s18 + $0x8] sm:$0xff]  ;;  %v331_v31 = vld [vmem:[%s1910_s18 + $0x30] sm:$0xff]  ;;  %v334_v33 = vpack.c.bf16 %v328_v30, %v327_v29  ;;  %s1990_s13 = scalar_lea.vmem [#allocation8], %s1344_s26  ;;  %vm567_vm0 = vcmask 261120   ;;  %s1397_s29 = sshll.u32 %s1793_s25, 9 }
  0x61   : > { %v329_v24 = vld [vmem:[%s1910_s18 + $0x20] sm:$0xff]  ;;  %v330_v25 = vld [vmem:[%s1910_s18 + $0x28] sm:$0xff]  ;;  %v333_v27 = vpack.c.bf16 %v326_v23, %v325_v22  ;;  %v332_v32 = vld [vmem:[%s1910_s18 + $0x38] sm:$0xff]  ;;  %s2363_s14 = scalar_lea.hbm %s2575_s4, %s1397_s29  ;;  %s1163_s16 = sshll.u32 %s1990_s13, 4  ;;  %s2366_s16 = int_to_ptr.vmem [resolvable:$true] %s1163_s16 }
  0x62   : > { %438 = vmatpush1.bf16.msra.mxu0 %v1527_v6  ;;  %1432 = vmatpush1.bf16.msra.mxu1 %v1527_v6  ;;  %v335_v28 = vpack.c.bf16 %v330_v25, %v329_v24  ;;  %v336_v34 = vpack.c.bf16 %v332_v32, %v331_v31  ;;  %v2002_v60 = vld [vmem:[#allocation7] ss:$0 sm:$0xff]  ;;  %s1140_s8 = scalar_lea.sflag [#allocation4], %s1904_s12  ;;  %s1623_s10 = scalar_lea.vmem %s2366_s16, 512 }
  0x63   : > { %439 = vmatprep.subr.bf16.mxu0 %v1528_v7  ;;  %1425 = vmatprep.subr.bf16.mxu1 %v1528_v7  ;;  %p1624_p3 = scmp.ne.s32.totalorder %s2366_s16, %s1623_s10  ;;  %p2596_p2 = scmp.ne.s32.totalorder %s2588_s30, 0 }
  0x64   : > { %927 = vrot.lane.b32.xlu0 %v1378_v16, %s1731_s20  ;;  %s1732_s26 = smov [#allocation8]  }
  0x65   : > { %p1625_p7 = pnand %p1624_p3, %p2596_p2 }
  0x66   : > { %440 = vmatpush1.bf16.msra.mxu0 %v1530_v8  ;;  %1433 = vmatpush1.bf16.msra.mxu1 %v1530_v8 }
  0x67   : > { %441 = vmatprep.subr.bf16.mxu0 %v1531_v9  ;;  %1426 = vmatprep.subr.bf16.mxu1 %v1531_v9  ;;  %v1373_v9 = vld [vmem:[%s2574_s3] ss:$0 sm:$0xff]  ;;  %p1626_p11 = pneg %p1625_p7 }
  0x68   : > { %854 = vrot.lane.b32.xlu0 %v1377_v19, %s1730_s17 }
  0x6a   : > { %442 = vmatpush1.bf16.msra.mxu0 %v1533_v12  ;;  %1434 = vmatpush1.bf16.msra.mxu1 %v1533_v12 }
  0x6b   : > { %443 = vmatprep.subr.bf16.mxu0 %v1534_v14  ;;  %1427 = vmatprep.subr.bf16.mxu1 %v1534_v14 }
  0x6c   : > { %1000 = vrot.lane.b32.xlu0 %v1379_v26, %s1731_s20 }
  0x6e   : > { %444 = vmatpush1.bf16.msra.mxu0 %v1536_v15  ;;  %1435 = vmatpush1.bf16.msra.mxu1 %v1536_v15 }
  0x6f   : > { %445 = vmatprep.subr.bf16.mxu0 %v1537_v17  ;;  %1428 = vmatprep.subr.bf16.mxu1 %v1537_v17 }
  0x72   : > { %446 = vmatpush1.bf16.msra.mxu0 %v1539_v18  ;;  %1436 = vmatpush1.bf16.msra.mxu1 %v1539_v18 }
  0x73   : > { %447 = vmatprep.subr.bf16.mxu0 %v1540_v20  ;;  %1429 = vmatprep.subr.bf16.mxu1 %v1540_v20 }
  0x76   : > { %448 = vmatpush1.bf16.msra.mxu0 %v1542_v21  ;;  %1437 = vmatpush1.bf16.msra.mxu1 %v1542_v21 }
  0x79   : > { %466 = vmatmul.mubr.bf16.vlgmr.msra.gmra.mxu0 %v333_v27  ;;  %486 = vmatmul.mubr.bf16.vlgmr.msra.gmra.mxu1 %v335_v28 }
  0x7a   : > { %475 = vmatprep.mubr.bf16.mxu0 %v1728_v0  ;;  %495 = vmatprep.mubr.bf16.mxu1 %v1728_v0 }
  0x81   : > { %476 = vmatmul.mubr.bf16.gmra.mxu0 %v334_v33  ;;  %496 = vmatmul.mubr.bf16.gmra.mxu1 %v336_v34 }
  0xce   : > { %v1947_v35 = vpop.permute.xlu0 %635 }
  0xcf   : > { %v1951_v37 = vpop.permute.xlu1 %708 }
  0xd2   : > { %v1949_v36 = vpop.permute.xlu0 %781 }
  0xd6   : > { %v1957_v40 = vpop.permute.xlu0 %927 }
  0xda   : > { %v1984_v53 = vpop.permute.xlu0 %854 }
  0xde   : > { %v2024_v4 = vpop.permute.xlu0 %1000 }
 0x139   : > { %v1953_v38 = vpop.f32.mrf.mxu0  ;;  %v1955_v39 = vpop.f32.mrf.mxu1 }
 0x13a   : > { %v711_v41 = vmul.f32 %v1951_v37, %v1953_v38  ;;  %v638_v42 = vmul.f32 %v1947_v35, %v1953_v38  ;;  %v715_v49 = vmul.f32 %v1951_v37, %v1955_v39  ;;  %v642_v50 = vmul.f32 %v1947_v35, %v1955_v39 }
 0x13b   : > { %v469_v43 = vpop.f32.mrf.mxu0  ;;  %v489_v44 = vpop.f32.mrf.mxu1  ;;  %v857_v56 = vmul.f32 %v1984_v53, %v1953_v38  ;;  %v784_v57 = vmul.f32 %v1949_v36, %v1953_v38  ;;  %v861_v2 = vmul.f32 %v1984_v53, %v1955_v39  ;;  %v788_v3 = vmul.f32 %v1949_v36, %v1955_v39 }
 0x13c   : > { %546 = vst [vmem:[%s1966_s11] sm:$0xff] %v469_v43  ;;  %550 = vst [vmem:[%s1966_s11 + $0x20] sm:$0xff] %v489_v44  ;;  %727 = vrot.lane.b32.xlu0 %v711_v41, %s1731_s20  ;;  %654 = vrot.lane.b32.xlu1 %v638_v42, %s1731_s20  ;;  %v1003_v7 = vmul.f32 %v2024_v4, %v1953_v38  ;;  %v930_v8 = vmul.f32 %v1957_v40, %v1953_v38 }
 0x13d   : > { %v1972_v45 = vpop.f32.mrf.mxu0  ;;  %v1974_v46 = vpop.f32.mrf.mxu1  ;;  %v1007_v14 = vmul.f32 %v2024_v4, %v1955_v39  ;;  %v934_v15 = vmul.f32 %v1957_v40, %v1955_v39  ;;  %v559_v27 = vmul.f32 %v2002_v60, %v1953_v38  ;;  %v563_v30 = vmul.f32 %v2002_v60, %v1955_v39 }
 0x13e   : > { %v1402_v47 = vpack.c.bf16 %v1972_v45, %v1953_v38  ;;  %v1412_v48 = vpack.c.bf16 %v1974_v46, %v1955_v39  ;;  %v2010_v61 = vmul.f32 %v2002_v60, %v1972_v45  ;;  %v639_v20 = vmul.f32 %v1947_v35, %v1972_v45 }
 0x13f   : > { %v473_v51 = vpop.f32.mrf.mxu0  ;;  %v493_v52 = vpop.f32.mrf.mxu1  ;;  %v712_v21 = vmul.f32 %v1951_v37, %v1972_v45  ;;  %v716_v22 = vmul.f32 %v1951_v37, %v1974_v46  ;;  %v785_v23 = vmul.f32 %v1949_v36, %v1972_v45  ;;  %v931_v24 = vmul.f32 %v1957_v40, %v1972_v45 }
 0x140   : > { %547 = vst [vmem:[%s1966_s11 + $0x8] sm:$0xff] %v473_v51  ;;  %551 = vst [vmem:[%s1966_s11 + $0x28] sm:$0xff] %v493_v52  ;;  %735 = vrot.lane.b32.xlu0 %v715_v49, %s1731_s20  ;;  %662 = vrot.lane.b32.xlu1 %v642_v50, %s1731_s20  ;;  %v858_v25 = vmul.f32 %v1984_v53, %v1972_v45  ;;  %v862_v26 = vmul.f32 %v1984_v53, %v1974_v46  ;;  %v568_v28 = vsel %vm567_vm0, %v559_v27, 0.0 }
 0x141   : > { %1403 = vst [vmem:[%s1990_s13] sm:$0xff] %v1402_v47   ;;  %1420 = vst [vmem:[%s1990_s13 + $0x10] sm:$0xff] %v1412_v48   ;;  %v1994_v54 = vpop.f32.mrf.mxu0  ;;  %v1996_v55 = vpop.f32.mrf.mxu1  ;;  %v1004_v29 = vmul.f32 %v2024_v4, %v1972_v45  ;;  %v580_v31 = vsel %vm567_vm0, %v563_v30, 0.0  ;;  %v1008_v32 = vmul.f32 %v2024_v4, %v1974_v46  ;;  %v597_v33 = vmul.f32 %v1373_v9, %v1953_v38 }
 0x142   : > { %v2043_v10 = vmul.f32 %v2002_v60, %v1994_v54  ;;  %v2046_v11 = vmul.f32 %v1373_v9, %v1994_v54  ;;  %v2063_v16 = vmul.f32 %v2002_v60, %v1996_v55  ;;  %v2066_v17 = vmul.f32 %v1373_v9, %v1996_v55 }
 0x143   : > { %v479_v58 = vpop.f32.mrf.mxu0  ;;  %v499_v59 = vpop.f32.mrf.mxu1  ;;  %v605_v34 = vsel %vm567_vm0, %v597_v33, 0.0  ;;  %v601_v41 = vmul.f32 %v1373_v9, %v1955_v39  ;;  %v643_v43 = vmul.f32 %v1947_v35, %v1974_v46  ;;  %v789_v44 = vmul.f32 %v1949_v36, %v1974_v46 }
 0x144   : > { %548 = vst [vmem:[%s1966_s11 + $0x10] sm:$0xff] %v479_v58  ;;  %552 = vst [vmem:[%s1966_s11 + $0x30] sm:$0xff] %v499_v59  ;;  %873 = vrot.lane.b32.xlu0 %v857_v56, %s1730_s17  ;;  %800 = vrot.lane.b32.xlu1 %v784_v57, %s1730_s17  ;;  %v564_v38 = vmul.f32 %v2002_v60, %v1974_v46  ;;  %v935_v39 = vmul.f32 %v1957_v40, %v1974_v46 }
 0x145   : > { %v2012_v62 = vpop.f32.mrf.mxu0  ;;  %v2014_v63 = vpop.f32.mrf.mxu1  ;;  %v617_v42 = vsel %vm567_vm0, %v601_v41, 0.0  ;;  %v598_v48 = vmul.f32 %v1373_v9, %v1972_v45  ;;  %v602_v50 = vmul.f32 %v1373_v9, %v1974_v46  ;;  %v640_v52 = vmul.f32 %v1947_v35, %v1994_v54 }
 0x146   : > { %v1407_v0 = vpack.c.bf16 %v2012_v62, %v1994_v54  ;;  %v1417_v1 = vpack.c.bf16 %v2014_v63, %v1996_v55  ;;  %v2050_v12 = vmul.f32 %v2002_v60, %v2012_v62  ;;  %v2053_v13 = vmul.f32 %v1373_v9, %v2012_v62 }
 0x147   : > { %v483_v5 = vpop.f32.mrf.mxu0  ;;  %v503_v6 = vpop.f32.mrf.mxu1  ;;  %v2070_v18 = vmul.f32 %v2002_v60, %v2014_v63  ;;  %v2073_v19 = vmul.f32 %v1373_v9, %v2014_v63  ;;  %v583_v47 = vsel %vm567_vm0, %v564_v38, 0.0  ;;  %v608_v49 = vsel %vm567_vm0, %v598_v48, 0.0 }
 0x148   : > { %881 = vrot.lane.b32.xlu0 %v861_v2, %s1730_s17  ;;  %808 = vrot.lane.b32.xlu1 %v788_v3, %s1730_s17  ;;  %549 = vst [vmem:[%s1966_s11 + $0x18] sm:$0xff] %v483_v5  ;;  %1419 = vst [vmem:[%s1990_s13 + $0x8] sm:$0xff] %v1407_v0   ;;  %v620_v51 = vsel %vm567_vm0, %v602_v50, 0.0  ;;  %v644_v56 = vmul.f32 %v1947_v35, %v1996_v55  ;;  %v571_v45 = vsel %vm567_vm0, %v2010_v61, 0.0 }
 0x149   : > { %1421 = vst [vmem:[%s1990_s13 + $0x18] sm:$0xff] %v1417_v1   ;;  %553 = vst [vmem:[%s1966_s11 + $0x38] sm:$0xff] %v503_v6  ;;  %v713_v46 = vmul.f32 %v1951_v37, %v1994_v54  ;;  %v786_v57 = vmul.f32 %v1949_v36, %v1994_v54  ;;  %v790_v58 = vmul.f32 %v1949_v36, %v1996_v55 }
 0x14a   : > { %v932_v59 = vmul.f32 %v1957_v40, %v1994_v54  ;;  %v936_v60 = vmul.f32 %v1957_v40, %v1996_v55  ;;  %v717_v61 = vmul.f32 %v1951_v37, %v1996_v55  ;;  %v859_v0 = vmul.f32 %v1984_v53, %v1994_v54 }
 0x14b   : > { %v863_v1 = vmul.f32 %v1984_v53, %v1996_v55  ;;  %v1005_v2 = vmul.f32 %v2024_v4, %v1994_v54  ;;  %v1009_v3 = vmul.f32 %v2024_v4, %v1996_v55  ;;  %v714_v55 = vmul.f32 %v1951_v37, %v2012_v62 }
 0x14c   : > { %1019 = vrot.lane.b32.xlu0 %v1003_v7, %s1729_s27  ;;  %946 = vrot.lane.b32.xlu1 %v930_v8, %s1729_s27  ;;  %v574_v7 = vsel %vm567_vm0, %v2043_v10, 0.0  ;;  %v611_v10 = vsel %vm567_vm0, %v2046_v11, 0.0  ;;  %v864_v11 = vmul.f32 %v1984_v53, %v2014_v63  ;;  %v937_v41 = vmul.f32 %v1957_v40, %v2014_v63 }
 0x150   : > { %1027 = vrot.lane.b32.xlu0 %v1007_v14, %s1729_s27  ;;  %954 = vrot.lane.b32.xlu1 %v934_v15, %s1729_s27  ;;  %v586_v14 = vsel %vm567_vm0, %v2063_v16, 0.0  ;;  %v623_v16 = vsel %vm567_vm0, %v2066_v17, 0.0  ;;  %v1010_v17 = vmul.f32 %v2024_v4, %v2014_v63 }
 0x154   : > { %656 = vrot.lane.b32.xlu1 %v639_v20, %s1731_s20  ;;  %v718_v20 = vmul.f32 %v1951_v37, %v2014_v63 }
 0x158   : > { %729 = vrot.lane.b32.xlu1 %v712_v21, %s1731_s20  ;;  %v860_v21 = vmul.f32 %v1984_v53, %v2012_v62  ;;  %v641_v53 = vmul.f32 %v1947_v35, %v2012_v62 }
 0x15c   : > { %737 = vrot.lane.b32.xlu1 %v716_v22, %s1731_s20 }
 0x160   : > { %802 = vrot.lane.b32.xlu1 %v785_v23, %s1730_s17  ;;  %v1006_v23 = vmul.f32 %v2024_v4, %v2012_v62  ;;  %v787_v4 = vmul.f32 %v1949_v36, %v2012_v62 }
 0x164   : > { %948 = vrot.lane.b32.xlu1 %v931_v24, %s1729_s27 }
 0x168   : > { %875 = vrot.lane.b32.xlu1 %v858_v25, %s1730_s17 }
 0x16c   : > { %883 = vrot.lane.b32.xlu1 %v862_v26, %s1730_s17 }
 0x16f   : > { %569 = vadd.xlane.f32.xlu0 %v568_v28  ;;  %v645_v28 = vmul.f32 %v1947_v35, %v2014_v63  ;;  %v933_v35 = vmul.f32 %v1957_v40, %v2012_v62 }
 0x170   : > { %1021 = vrot.lane.b32.xlu1 %v1004_v29, %s1729_s27 }
 0x173   : > { %581 = vadd.xlane.f32.xlu0 %v580_v31 }
 0x174   : > { %1029 = vrot.lane.b32.xlu1 %v1008_v32, %s1729_s27  ;;  %v791_v32 = vmul.f32 %v1949_v36, %v2014_v63  ;;  %v614_v63 = vsel %vm567_vm0, %v2053_v13, 0.0 }
 0x177   : > { %606 = vadd.xlane.f32.xlu0 %v605_v34 }
 0x17b   : > { %618 = vadd.xlane.f32.xlu0 %v617_v42 }
 0x191   : > { %664 = vrot.lane.b32.xlu0 %v643_v43, %s1731_s20 }
 0x195   : > { %810 = vrot.lane.b32.xlu0 %v789_v44, %s1730_s17  ;;  %v577_v44 = vsel %vm567_vm0, %v2050_v12, 0.0  ;;  %v626_v12 = vsel %vm567_vm0, %v2073_v19, 0.0 }
 0x198   : > { %584 = vadd.xlane.f32.xlu1 %v583_v47  ;;  %v589_v47 = vsel %vm567_vm0, %v2070_v18, 0.0 }
 0x199   : > { %956 = vrot.lane.b32.xlu0 %v935_v39, %s1729_s27 }
 0x19c   : > { %609 = vadd.xlane.f32.xlu1 %v608_v49 }
 0x1a0   : > { %621 = vadd.xlane.f32.xlu1 %v620_v51 }
 0x1ae   : > { %v2166_v5 = vpop.permute.xlu1 %654  ;;  %v728_v25 = vpop.permute.xlu0 %727 }
 0x1af   : > { %v678_v18 = vsel %vm567_vm0, %v2166_v5, 0.0 }
 0x1b1   : > { %658 = vrot.lane.b32.xlu1 %v640_v52, %s1731_s20 }
 0x1b2   : > { %v2168_v6 = vpop.permute.xlu1 %662  ;;  %v736_v27 = vpop.permute.xlu0 %735 }
 0x1b3   : > { %v690_v13 = vsel %vm567_vm0, %v2168_v6, 0.0 }
 0x1b5   : > { %666 = vrot.lane.b32.xlu1 %v644_v56, %s1731_s20  ;;  %v751_v56 = vsel %vm567_vm0, %v728_v25, 0.0 }
 0x1b6   : > { %v2172_v8 = vpop.permute.xlu1 %800  ;;  %v874_v30 = vpop.permute.xlu0 %873 }
 0x1b7   : > { %v824_v19 = vsel %vm567_vm0, %v2172_v8, 0.0 }
 0x1b8   : > { %572 = vadd.xlane.f32.xlu0 %v571_v45 }
 0x1b9   : > { %731 = vrot.lane.b32.xlu1 %v713_v46, %s1731_s20  ;;  %v763_v46 = vsel %vm567_vm0, %v736_v27, 0.0 }
 0x1ba   : > { %v2174_v9 = vpop.permute.xlu1 %808  ;;  %v2224_v33 = vpop.permute.xlu0 %881 }
 0x1bd   : > { %804 = vrot.lane.b32.xlu1 %v786_v57, %s1730_s17 }
 0x1be   : > { %v2176_v54 = vpop.permute.xlu1 %946  ;;  %v2233_v42 = vpop.permute.xlu0 %1019 }
 0x1c1   : > { %812 = vrot.lane.b32.xlu1 %v790_v58, %s1730_s17 }
 0x1c2   : > { %v2183_v15 = vpop.permute.xlu1 %954  ;;  %v2238_v36 = vpop.permute.xlu0 %1027 }
 0x1c5   : > { %950 = vrot.lane.b32.xlu1 %v932_v59, %s1729_s27  ;;  %v836_v59 = vsel %vm567_vm0, %v2174_v9, 0.0 }
 0x1c6   : > { %v2194_v22 = vpop.permute.xlu1 %656 }
 0x1c9   : > { %958 = vrot.lane.b32.xlu1 %v936_v60, %s1729_s27 }
 0x1ca   : > { %v730_v37 = vpop.permute.xlu1 %729 }
 0x1cb   : > { %v754_v57 = vsel %vm567_vm0, %v730_v37, 0.0 }
 0x1ce   : > { %739 = vrot.lane.b32.xlu0 %v717_v61, %s1731_s20  ;;  %v738_v24 = vpop.permute.xlu1 %737 }
 0x1cf   : > { %v766_v60 = vsel %vm567_vm0, %v738_v24, 0.0 }
 0x1d2   : > { %877 = vrot.lane.b32.xlu0 %v859_v0, %s1730_s17  ;;  %v2206_v26 = vpop.permute.xlu1 %802 }
 0x1d6   : > { %885 = vrot.lane.b32.xlu0 %v863_v1, %s1730_s17  ;;  %v2213_v29 = vpop.permute.xlu1 %948  ;;  %v897_v1 = vsel %vm567_vm0, %v874_v30, 0.0 }
 0x1da   : > { %1023 = vrot.lane.b32.xlu0 %v1005_v2, %s1729_s27  ;;  %v2219_v31 = vpop.permute.xlu1 %875 }
 0x1de   : > { %1031 = vrot.lane.b32.xlu0 %v1009_v3, %s1729_s27  ;;  %v2228_v34 = vpop.permute.xlu1 %883  ;;  %v681_v3 = vsel %vm567_vm0, %v2194_v22, 0.0 }
 0x1e2   : > { %v2236_v43 = vpop.permute.xlu1 %1021 }
 0x1e6   : > { %v2242_v38 = vpop.permute.xlu1 %1029 }
 0x1ed   : > { %575 = vadd.xlane.f32.xlu1 %v574_v7 }
 0x1f8   : > { %v2244_v62 = vpop.xlane.xlu0 %569 }
 0x1fc   : > { %v2252_v39 = vpop.xlane.xlu0 %581 }
 0x1fd   : > { %587 = vadd.xlane.f32.xlu0 %v586_v14 }
 0x1fe   : > { %733 = vrot.lane.b32.xlu1 %v714_v55, %s1731_s20  ;;  %v827_v55 = vsel %vm567_vm0, %v2206_v26, 0.0 }
 0x200   : > { %v2258_v49 = vpop.xlane.xlu0 %606 }
 0x201   : > { %612 = vadd.xlane.f32.xlu0 %v611_v10 }
 0x202   : > { %741 = vrot.lane.b32.xlu1 %v718_v20, %s1731_s20 }
 0x204   : > { %v2266_v51 = vpop.xlane.xlu0 %618 }
 0x205   : > { %624 = vadd.xlane.f32.xlu0 %v623_v16 }
 0x206   : > { %879 = vrot.lane.b32.xlu1 %v860_v21, %s1730_s17 }
 0x208   : > { %v665_v45 = vpop.permute.xlu0 %664 }
 0x209   : > { %v693_v8 = vsel %vm567_vm0, %v665_v45, 0.0 }
 0x20a   : > { %887 = vrot.lane.b32.xlu1 %v864_v11, %s1730_s17 }
 0x20c   : > { %v811_v61 = vpop.permute.xlu0 %810 }
 0x20d   : > { %v839_v2 = vsel %vm567_vm0, %v811_v61, 0.0 }
 0x20e   : > { %1025 = vrot.lane.b32.xlu1 %v1006_v23, %s1729_s27 }
 0x210   : > { %v957_v7 = vpop.permute.xlu0 %956 }
 0x212   : > { %1033 = vrot.lane.b32.xlu1 %v1010_v17, %s1729_s27 }
 0x21b   : > { %660 = vrot.lane.b32.xlu0 %v641_v53, %s1731_s20 }
 0x21f   : > { %668 = vrot.lane.b32.xlu0 %v645_v28, %s1731_s20 }
 0x221   : > { %v2248_v40 = vpop.xlane.xlu1 %584 }
 0x223   : > { %806 = vrot.lane.b32.xlu0 %v787_v4, %s1730_s17 }
 0x225   : > { %v2254_v48 = vpop.xlane.xlu1 %609 }
 0x227   : > { %814 = vrot.lane.b32.xlu0 %v791_v32, %s1730_s17 }
 0x229   : > { %v2262_v50 = vpop.xlane.xlu1 %621 }
 0x22b   : > { %952 = vrot.lane.b32.xlu0 %v933_v35, %s1729_s27 }
 0x22d   : > { %v659_v52 = vpop.permute.xlu1 %658 }
 0x22e   : > { %v684_v20 = vsel %vm567_vm0, %v659_v52, 0.0 }
 0x22f   : > { %960 = vrot.lane.b32.xlu0 %v937_v41, %s1729_s27  ;;  %s1179_s27 = sshll.u32 %s1966_s11, 4  ;;  %s1627_s11 = sshll.u32 %s1732_s26, 4  ;;  %s2353_s27 = int_to_ptr.vmem [resolvable:$true] %s1179_s27  ;;  %s1628_s11 = int_to_ptr.vmem [resolvable:$false] %s1627_s11 }
 0x230   : > { %s1629_s9 = scalar_lea.vmem %s1628_s11, 1024  ;;  %p1630_p12 = scmp.lt.s32.totalorder %s2366_s16, %s1628_s11 }
 0x231   : > { %v667_v58 = vpop.permute.xlu1 %666  ;;  %p1631_p13 = scmp.lt.s32.totalorder %s1629_s9, %s1623_s10 }
 0x232   : > { %v696_v5 = vsel %vm567_vm0, %v667_v58, 0.0 }
 0x233   : > { %p1632_p0 = por %p1631_p13, %p1630_p12 }
 0x235   : > { %v732_v0 = vpop.permute.xlu1 %731  ;;  %p1633_p5 = pnand %p1632_p0, %p1626_p11 }
 0x236   : > { %578 = vadd.xlane.f32.xlu1 %v577_v44  ;;  %v757_v22 = vsel %vm567_vm0, %v732_v0, 0.0 }
 0x239   : > { %v805_v6 = vpop.permute.xlu1 %804 }
 0x23a   : > { %590 = vadd.xlane.f32.xlu1 %v589_v47  ;;  %v830_v9 = vsel %vm567_vm0, %v805_v6, 0.0  ;;  %v912_v6 = vsel %vm567_vm0, %v2228_v34, 0.0  ;;  %v1043_v34 = vsel %vm567_vm0, %v2233_v42, 0.0  ;;  %v1058_v42 = vsel %vm567_vm0, %v2242_v38, 0.0 }
 0x23d   : > { %v813_v10 = vpop.permute.xlu1 %812 }
 0x23e   : > { %615 = vadd.xlane.f32.xlu1 %v614_v63  ;;  %v842_v17 = vsel %vm567_vm0, %v813_v10, 0.0 }
 0x241   : > { %v2283_v14 = vpop.xlane.xlu0 %572  ;;  %v951_v21 = vpop.permute.xlu1 %950 }
 0x242   : > { %627 = vadd.xlane.f32.xlu1 %v626_v12  ;;  %v976_v45 = vsel %vm567_vm0, %v951_v21, 0.0 }
 0x245   : > { %v740_v16 = vpop.permute.xlu0 %739  ;;  %v959_v23 = vpop.permute.xlu1 %958 }
 0x246   : > { %679 = vadd.xlane.f32.xlu1 %v678_v18  ;;  %v769_v37 = vsel %vm567_vm0, %v740_v16, 0.0  ;;  %v988_v61 = vsel %vm567_vm0, %v959_v23, 0.0 }
 0x249   : > { %v878_v11 = vpop.permute.xlu0 %877 }
 0x24a   : > { %691 = vadd.xlane.f32.xlu1 %v690_v13 }
 0x24d   : > { %v886_v24 = vpop.permute.xlu0 %885 }
 0x24e   : > { %752 = vadd.xlane.f32.xlu0 %v751_v56  ;;  %825 = vadd.xlane.f32.xlu1 %v824_v19  ;;  %v973_v56 = vsel %vm567_vm0, %v2213_v29, 0.0 }
 0x251   : > { %v2293_v53 = vpop.permute.xlu0 %1023 }
 0x252   : > { %764 = vadd.xlane.f32.xlu0 %v763_v46  ;;  %755 = vadd.xlane.f32.xlu1 %v754_v57  ;;  %v970_v46 = vsel %vm567_vm0, %v2176_v54, 0.0  ;;  %v900_v54 = vsel %vm567_vm0, %v2219_v31, 0.0  ;;  %v915_v31 = vsel %vm567_vm0, %v886_v24, 0.0 }
 0x255   : > { %v2296_v4 = vpop.permute.xlu0 %1031 }
 0x256   : > { %837 = vadd.xlane.f32.xlu0 %v836_v59  ;;  %767 = vadd.xlane.f32.xlu1 %v766_v60  ;;  %v982_v59 = vsel %vm567_vm0, %v2183_v15, 0.0  ;;  %v985_v60 = vsel %vm567_vm0, %v957_v7, 0.0  ;;  %v903_v15 = vsel %vm567_vm0, %v878_v11, 0.0  ;;  %v909_v7 = vsel %vm567_vm0, %v2224_v33, 0.0 }
 0x257   : > { %v1049_v33 = vsel %vm567_vm0, %v2293_v53, 0.0 }
 0x25a   : > { %898 = vadd.xlane.f32.xlu0 %v897_v1  ;;  %840 = vadd.xlane.f32.xlu1 %v839_v2 }
 0x25e   : > { %682 = vadd.xlane.f32.xlu0 %v681_v3  ;;  %697 = vadd.xlane.f32.xlu1 %v696_v5 }
 0x262   : > { %694 = vadd.xlane.f32.xlu0 %v693_v8  ;;  %831 = vadd.xlane.f32.xlu1 %v830_v9 }
 0x266   : > { %828 = vadd.xlane.f32.xlu0 %v827_v55  ;;  %v1046_v55 = vsel %vm567_vm0, %v2236_v43, 0.0  ;;  %v1055_v43 = vsel %vm567_vm0, %v2238_v36, 0.0 }
 0x26a   : > { %685 = vadd.xlane.f32.xlu0 %v684_v20 }
 0x26e   : > { %758 = vadd.xlane.f32.xlu0 %v757_v22  ;;  %v1061_v22 = vsel %vm567_vm0, %v2296_v4, 0.0 }
 0x272   : > { %770 = vadd.xlane.f32.xlu0 %v769_v37 }
 0x276   : > { %v2291_v25 = vpop.xlane.xlu1 %575  ;;  %843 = vadd.xlane.f32.xlu0 %v842_v17 }
 0x27a   : > { %v734_v26 = vpop.permute.xlu1 %733 }
 0x27b   : > { %v760_v18 = vsel %vm567_vm0, %v734_v26, 0.0 }
 0x27e   : > { %v742_v27 = vpop.permute.xlu1 %741 }
 0x27f   : > { %v772_v28 = vsel %vm567_vm0, %v742_v27, 0.0 }
 0x280   : > { %773 = vadd.xlane.f32.xlu1 %v772_v28 }
 0x282   : > { %v880_v29 = vpop.permute.xlu1 %879 }
 0x283   : > { %v906_v3 = vsel %vm567_vm0, %v880_v29, 0.0 }
 0x286   : > { %v2298_v30 = vpop.xlane.xlu0 %587  ;;  %v888_v1 = vpop.permute.xlu1 %887 }
 0x287   : > { %v918_v8 = vsel %vm567_vm0, %v888_v1, 0.0 }
 0x28a   : > { %v2300_v32 = vpop.xlane.xlu0 %612  ;;  %v1026_v5 = vpop.permute.xlu1 %1025 }
 0x28b   : > { %v1052_v20 = vsel %vm567_vm0, %v1026_v5, 0.0 }
 0x28e   : > { %v2302_v35 = vpop.xlane.xlu0 %624  ;;  %v1034_v9 = vpop.permute.xlu1 %1033 }
 0x28f   : > { %v1064_v11 = vsel %vm567_vm0, %v1034_v9, 0.0 }
 0x292   : > { %v661_v41 = vpop.permute.xlu0 %660 }
 0x293   : > { %v687_v44 = vsel %vm567_vm0, %v661_v41, 0.0 }
 0x294   : > { %688 = vadd.xlane.f32.xlu0 %v687_v44 }
 0x296   : > { %v669_v47 = vpop.permute.xlu0 %668 }
 0x297   : > { %v699_v63 = vsel %vm567_vm0, %v669_v47, 0.0 }
 0x298   : > { %700 = vadd.xlane.f32.xlu0 %v699_v63 }
 0x29a   : > { %v807_v12 = vpop.permute.xlu0 %806 }
 0x29b   : > { %v833_v13 = vsel %vm567_vm0, %v807_v12, 0.0 }
 0x29c   : > { %761 = vadd.xlane.f32.xlu0 %v760_v18  ;;  %834 = vadd.xlane.f32.xlu1 %v833_v13 }
 0x29e   : > { %v815_v52 = vpop.permute.xlu0 %814 }
 0x29f   : > { %v845_v19 = vsel %vm567_vm0, %v815_v52, 0.0 }
 0x2a0   : > { %974 = vadd.xlane.f32.xlu0 %v973_v56  ;;  %846 = vadd.xlane.f32.xlu1 %v845_v19 }
 0x2a2   : > { %v953_v57 = vpop.permute.xlu0 %952 }
 0x2a3   : > { %v979_v58 = vsel %vm567_vm0, %v953_v57, 0.0 }
 0x2a4   : > { %977 = vadd.xlane.f32.xlu0 %v976_v45  ;;  %971 = vadd.xlane.f32.xlu1 %v970_v46 }
 0x2a6   : > { %v961_v0 = vpop.permute.xlu0 %960 }
 0x2a7   : > { %v991_v2 = vsel %vm567_vm0, %v961_v0, 0.0 }
 0x2a8   : > { %980 = vadd.xlane.f32.xlu0 %v979_v58  ;;  %983 = vadd.xlane.f32.xlu1 %v982_v59 }
 0x2ac   : > { %986 = vadd.xlane.f32.xlu0 %v985_v60  ;;  %989 = vadd.xlane.f32.xlu1 %v988_v61 }
 0x2b0   : > { %992 = vadd.xlane.f32.xlu0 %v991_v2  ;;  %901 = vadd.xlane.f32.xlu1 %v900_v54 }
 0x2b4   : > { %904 = vadd.xlane.f32.xlu0 %v903_v15  ;;  %907 = vadd.xlane.f32.xlu1 %v906_v3 }
 0x2b8   : > { %910 = vadd.xlane.f32.xlu0 %v909_v7  ;;  %913 = vadd.xlane.f32.xlu1 %v912_v6 }
 0x2bc   : > { %916 = vadd.xlane.f32.xlu0 %v915_v31  ;;  %919 = vadd.xlane.f32.xlu1 %v918_v8 }
 0x2bf   : > { %v2332_v10 = vpop.xlane.xlu1 %578 }
 0x2c0   : > { %1044 = vadd.xlane.f32.xlu0 %v1043_v34  ;;  %1047 = vadd.xlane.f32.xlu1 %v1046_v55 }
 0x2c3   : > { %v2339_v16 = vpop.xlane.xlu1 %590 }
 0x2c4   : > { %1050 = vadd.xlane.f32.xlu0 %v1049_v33  ;;  %1053 = vadd.xlane.f32.xlu1 %v1052_v20 }
 0x2c7   : > { %v2345_v21 = vpop.xlane.xlu1 %615 }
 0x2c8   : > { %1056 = vadd.xlane.f32.xlu0 %v1055_v43  ;;  %1059 = vadd.xlane.f32.xlu1 %v1058_v42 }
 0x2cb   : > { %v2350_v37 = vpop.xlane.xlu1 %627 }
 0x2cc   : > { %1062 = vadd.xlane.f32.xlu0 %v1061_v22  ;;  %1065 = vadd.xlane.f32.xlu1 %v1064_v11 }
 0x2cf   : > { %v2355_v36 = vpop.xlane.xlu1 %679 }
 0x2d7   : > { %v2357_v38 = vpop.xlane.xlu0 %752 }
 0x2d8   : > { %1636 = shalt.err (!%p1633_p5)
}
 0x2d9   : > { %s1637_s13 = scalar_lea.hbm %s2363_s14, 512  ;;  %s1641_s15 = scalar_lea.hbm %s2575_s4, 2048 }
 0x2da   : > { %p1638_p10 = scmp.ne.s32.totalorder %s2363_s14, %s1637_s13  ;;  %p1642_p4 = scmp.lt.s32.totalorder %s2363_s14, %s2575_s4 }
 0x2db   : > { %p1643_p6 = scmp.lt.s32.totalorder %s1641_s15, %s1637_s13 }
 0x2dc   : > { %p1639_p9 = pnand %p1638_p10, %p2596_p2 }
 0x2dd   : > { %p1644_p8 = por %p1643_p6, %p1642_p4 }
 0x2de   : > { %p1640_p1 = pneg %p1639_p9 }
 0x2e0   : > { %p1645_p3 = pnand %p1644_p8, %p1640_p1 }
 0x2e2   : > { %1648 = shalt.err (!%p1645_p3)
}
 0x2e3   : > { %s1733_s10 = smov 4   ;;  %v2393_v23 = vpop.xlane.xlu0 %764  ;;  %s1398_s11 = sshll.u32 %s1793_s25, 10  ;;  %v692_v17 = vpop.xlane.xlu1 %691  ;;  %vm1067_vm1 = vcmask 7168  }
 0x2e4   : > { %1448 = dma.vmem_to_hbm [thread:$0]  (%p2596_p2), %s2366_s16, 512, %s2363_s14, %s1140_s8, %s1730_s17, %s1730_s17, %s1733_s10  }
 0x2e5   : > { %s2399_s18 = scalar_lea.hbm %s2576_s5, %s1398_s11  ;;  %s1145_s29 = scalar_lea.sflag [#allocation10], %s1904_s12 }
 0x2e6   : > { %s1649_s15 = scalar_lea.vmem %s2353_s27, 1024  ;;  %s1734_s20 = smov [#allocation9]  }
 0x2e7   : > { %p1650_p7 = scmp.ne.s32.totalorder %s2353_s27, %s1649_s15  ;;  %s1653_s26 = sshll.u32 %s1734_s20, 4  ;;  %s1654_s26 = int_to_ptr.vmem [resolvable:$false] %s1653_s26 }
 0x2e8   : > { %s1655_s17 = scalar_lea.vmem %s1654_s26, 2048  ;;  %p1656_p13 = scmp.lt.s32.totalorder %s2353_s27, %s1654_s26 }
 0x2e9   : > { %p1651_p11 = pnand %p1650_p7, %p2596_p2  ;;  %p1657_p0 = scmp.lt.s32.totalorder %s1655_s17, %s1649_s15 }
 0x2eb   : > { %p1652_p12 = pneg %p1651_p11  ;;  %p1658_p5 = por %p1657_p0, %p1656_p13 }
 0x2ed   : > { %p1659_p10 = pnand %p1658_p5, %p1652_p12 }
 0x2ef   : > { %1662 = shalt.err (!%p1659_p10)
}
 0x2f0   : > { %s1663_s14 = scalar_lea.hbm %s2399_s18, 1024  ;;  %s1667_s10 = scalar_lea.hbm %s2576_s5, 4096 }
 0x2f1   : > { %p1664_p9 = scmp.ne.s32.totalorder %s2399_s18, %s1663_s14  ;;  %p1668_p6 = scmp.lt.s32.totalorder %s2399_s18, %s2576_s5 }
 0x2f2   : > { %p1669_p8 = scmp.lt.s32.totalorder %s1667_s10, %s1663_s14 }
 0x2f3   : > { %p1665_p1 = pnand %p1664_p9, %p2596_p2 }
 0x2f4   : > { %p1670_p3 = por %p1669_p8, %p1668_p6 }
 0x2f5   : > { %p1666_p4 = pneg %p1665_p1 }
 0x2f7   : > { %p1671_p7 = pnand %p1670_p3, %p1666_p4 }
 0x2f9   : > { %1674 = shalt.err (!%p1671_p7)
}
 0x2fa   : > { %s1735_s13 = smov 128   ;;  %s1736_s15 = smov 8   ;;  %v1072_v24 = vsel %vm1067_vm1, %v2252_v39, %v692_v17  ;;  %vm1076_vm2 = vcmask 15360   ;;  %v838_v26 = vpop.xlane.xlu0 %837  ;;  %v826_v41 = vpop.xlane.xlu1 %825  ;;  %v1068_v31 = vsel %vm1067_vm1, %v2244_v62, %v2355_v36  ;;  %vm1085_vm3 = vcmask 23552  }
 0x2fb   : > { %1449 = dma.vmem_to_hbm [thread:$0]  (%p2596_p2), %s2353_s27, 1024, %s2399_s18, %s1145_s29, %s1735_s13, %s1735_s13, %s1736_s15   ;;  %v2427_v53 = vsel %vm1076_vm2, %v1072_v24, %v838_v26  ;;  %v1077_v8 = vsel %vm1076_vm2, %v1068_v31, %v826_v41  ;;  %vm1094_vm4 = vcmask 31744   ;;  %vm1103_vm5 = vcmask 39936  }
 0x2fc   : > { %s1346_s30 = sshll.u32 %s1793_s25, 3  ;;  %vm1112_vm6 = vcmask 48128   ;;  %vm1121_vm7 = vcmask 56320   ;;  %vm1130_vm8 = vcmask 64512  }
 0x2fd   : > { %p319_p2 = scmp.lt.s32.totalorder %s1346_s30, 31 }
 0x2fe   : > { %v2429_v27 = vpop.xlane.xlu0 %898  ;;  %v756_v47 = vpop.xlane.xlu1 %755 }
 0x2ff   : > { %s2603_s30 = smov (!%p319_p2, %s1346_s30), 31 }
 0x300   : > { %s1347_s25 = sshll.u32 %s2603_s30, 3 }
 0x301   : > { %s2480_s18 = scalar_lea.vmem %s2577_s6, %s1347_s25 }
 0x302   : > { %v683_v28 = vpop.xlane.xlu0 %682  ;;  %v2431_v12 = vpop.xlane.xlu1 %767 }
 0x303   : > { %v1069_v9 = vsel %vm1067_vm1, %v2283_v14, %v683_v28 }
 0x306   : > { %v695_v4 = vpop.xlane.xlu0 %694  ;;  %v841_v13 = vpop.xlane.xlu1 %840 }
 0x307   : > { %v1073_v14 = vsel %vm1067_vm1, %v2248_v40, %v695_v4 }
 0x308   : > { %v1082_v40 = vsel %vm1076_vm2, %v1073_v14, %v841_v13 }
 0x30a   : > { %v829_v44 = vpop.xlane.xlu0 %828  ;;  %v2437_v39 = vpop.xlane.xlu1 %697 }
 0x30b   : > { %v1078_v34 = vsel %vm1076_vm2, %v1069_v9, %v829_v44 }
 0x30e   : > { %v686_v63 = vpop.xlane.xlu0 %685  ;;  %v832_v19 = vpop.xlane.xlu1 %831 }
 0x30f   : > { %v1070_v43 = vsel %vm1067_vm1, %v2291_v25, %v686_v63 }
 0x310   : > { %v1079_v25 = vsel %vm1076_vm2, %v1070_v43, %v832_v19 }
 0x312   : > { %v2433_v18 = vpop.xlane.xlu0 %758  ;;  %v2441_v46 = vpop.xlane.xlu1 %773 }
 0x316   : > { %v2435_v52 = vpop.xlane.xlu0 %770 }
 0x31a   : > { %v2439_v56 = vpop.xlane.xlu0 %843 }
 0x31e   : > { %v689_v45 = vpop.xlane.xlu0 %688 }
 0x31f   : > { %v1071_v22 = vsel %vm1067_vm1, %v2332_v10, %v689_v45 }
 0x322   : > { %v701_v57 = vpop.xlane.xlu0 %700 }
 0x325   : > { %v835_v59 = vpop.xlane.xlu1 %834 }
 0x326   : > { %v2443_v58 = vpop.xlane.xlu0 %761  ;;  %v1080_v11 = vsel %vm1076_vm2, %v1071_v22, %v835_v59 }
 0x329   : > { %v847_v60 = vpop.xlane.xlu1 %846 }
 0x32a   : > { %v975_v29 = vpop.xlane.xlu0 %974 }
 0x32b   : > { %v1087_v42 = vsel %vm1085_vm3, %v1078_v34, %v975_v29 }
 0x32c   : > { %v1096_v36 = vsel %vm1094_vm4, %v1087_v42, %v2254_v48 }
 0x32d   : > { %v972_v0 = vpop.xlane.xlu1 %971  ;;  %v1105_v28 = vsel %vm1103_vm5, %v1096_v36, %v756_v47 }
 0x32e   : > { %v978_v61 = vpop.xlane.xlu0 %977  ;;  %v1086_v55 = vsel %vm1085_vm3, %v1077_v8, %v972_v0 }
 0x32f   : > { %v1095_v62 = vsel %vm1094_vm4, %v1086_v55, %v2258_v49  ;;  %v1088_v26 = vsel %vm1085_vm3, %v1079_v25, %v978_v61 }
 0x330   : > { %v1104_v10 = vsel %vm1103_vm5, %v1095_v62, %v2357_v38  ;;  %v1097_v48 = vsel %vm1094_vm4, %v1088_v26, %v2300_v32  ;;  %v1074_v32 = vsel %vm1067_vm1, %v2298_v30, %v2437_v39 }
 0x331   : > { %v984_v1 = vpop.xlane.xlu1 %983  ;;  %v1113_v44 = vsel %vm1112_vm6, %v1104_v10, %v2429_v27  ;;  %v1106_v59 = vsel %vm1103_vm5, %v1097_v48, %v2433_v18 }
 0x332   : > { %v981_v54 = vpop.xlane.xlu0 %980  ;;  %v1090_v63 = vsel %vm1085_vm3, %v2427_v53, %v984_v1  ;;  %v1083_v53 = vsel %vm1076_vm2, %v1074_v32, %v2439_v56 }
 0x333   : > { %v1089_v49 = vsel %vm1085_vm3, %v1080_v11, %v981_v54 }
 0x334   : > { %v1098_v4 = vsel %vm1094_vm4, %v1089_v49, %v2345_v21  ;;  %v1075_v21 = vsel %vm1067_vm1, %v2339_v16, %v701_v57  ;;  %v1099_v16 = vsel %vm1094_vm4, %v1090_v63, %v2266_v51 }
 0x335   : > { %v2445_v15 = vpop.xlane.xlu1 %989  ;;  %v1084_v27 = vsel %vm1076_vm2, %v1075_v21, %v847_v60  ;;  %v1107_v30 = vsel %vm1103_vm5, %v1098_v4, %v2443_v58 }
 0x336   : > { %v987_v2 = vpop.xlane.xlu0 %986  ;;  %v1092_v60 = vsel %vm1085_vm3, %v1083_v53, %v2445_v15 }
 0x337   : > { %v1091_v13 = vsel %vm1085_vm3, %v1082_v40, %v987_v2  ;;  %v1101_v54 = vsel %vm1094_vm4, %v1092_v60, %v2302_v35 }
 0x338   : > { %v1100_v39 = vsel %vm1094_vm4, %v1091_v13, %v2262_v50  ;;  %v1108_v50 = vsel %vm1103_vm5, %v1099_v16, %v2393_v23  ;;  %v1110_v35 = vsel %vm1103_vm5, %v1101_v54, %v2435_v52 }
 0x339   : > { %v902_v5 = vpop.xlane.xlu1 %901  ;;  %v1109_v0 = vsel %vm1103_vm5, %v1100_v39, %v2431_v12 }
 0x33a   : > { %v2447_v3 = vpop.xlane.xlu0 %992  ;;  %v1114_v38 = vsel %vm1112_vm6, %v1105_v28, %v902_v5 }
 0x33b   : > { %v1093_v18 = vsel %vm1085_vm3, %v1084_v27, %v2447_v3 }
 0x33c   : > { %v1102_v1 = vsel %vm1094_vm4, %v1093_v18, %v2350_v37 }
 0x33d   : > { %v908_v7 = vpop.xlane.xlu1 %907  ;;  %v1111_v37 = vsel %vm1103_vm5, %v1102_v1, %v2441_v46 }
 0x33e   : > { %v905_v6 = vpop.xlane.xlu0 %904  ;;  %v1116_v29 = vsel %vm1112_vm6, %v1107_v30, %v908_v7 }
 0x33f   : > { %v1115_v57 = vsel %vm1112_vm6, %v1106_v59, %v905_v6 }
 0x341   : > { %v914_v20 = vpop.xlane.xlu1 %913 }
 0x342   : > { %v911_v33 = vpop.xlane.xlu0 %910  ;;  %v1118_v15 = vsel %vm1112_vm6, %v1109_v0, %v914_v20 }
 0x343   : > { %v1117_v2 = vsel %vm1112_vm6, %v1108_v50, %v911_v33 }
 0x345   : > { %v920_v24 = vpop.xlane.xlu1 %919 }
 0x346   : > { %v917_v17 = vpop.xlane.xlu0 %916  ;;  %v1120_v7 = vsel %vm1112_vm6, %v1111_v37, %v920_v24 }
 0x347   : > { %v1119_v12 = vsel %vm1112_vm6, %v1110_v35, %v917_v17 }
 0x349   : > { %v1048_v47 = vpop.xlane.xlu1 %1047 }
 0x34a   : > { %v1045_v41 = vpop.xlane.xlu0 %1044  ;;  %v1123_v45 = vsel %vm1121_vm7, %v1114_v38, %v1048_v47 }
 0x34b   : > { %v1122_v19 = vsel %vm1121_vm7, %v1113_v44, %v1045_v41  ;;  %1132 = vst.msk [vmem:[%s2480_s18 + $0x8] sm:$0xff] %vm1130_vm8, %v1123_v45 }
 0x34c   : > { %1131 = vst.msk [vmem:[%s2480_s18] sm:$0xff] %vm1130_vm8, %v1122_v19 }
 0x34d   : > { %v1054_v56 = vpop.xlane.xlu1 %1053 }
 0x34e   : > { %v1051_v61 = vpop.xlane.xlu0 %1050  ;;  %v1125_v51 = vsel %vm1121_vm7, %v1116_v29, %v1054_v56 }
 0x34f   : > { %v1124_v58 = vsel %vm1121_vm7, %v1115_v57, %v1051_v61  ;;  %1134 = vst.msk [vmem:[%s2480_s18 + $0x18] sm:$0xff] %vm1130_vm8, %v1125_v51 }
 0x350   : > { %1133 = vst.msk [vmem:[%s2480_s18 + $0x10] sm:$0xff] %vm1130_vm8, %v1124_v58 }
 0x351   : > { %v1060_v5 = vpop.xlane.xlu1 %1059 }
 0x352   : > { %v1057_v3 = vpop.xlane.xlu0 %1056  ;;  %v1127_v23 = vsel %vm1121_vm7, %v1118_v15, %v1060_v5 }
 0x353   : > { %v1126_v6 = vsel %vm1121_vm7, %v1117_v2, %v1057_v3  ;;  %1136 = vst.msk [vmem:[%s2480_s18 + $0x28] sm:$0xff] %vm1130_vm8, %v1127_v23 }
 0x354   : > { %1135 = vst.msk [vmem:[%s2480_s18 + $0x20] sm:$0xff] %vm1130_vm8, %v1126_v6 }
 0x355   : > { %v1066_v8 = vpop.xlane.xlu1 %1065 }
 0x356   : > { %v1063_v31 = vpop.xlane.xlu0 %1062  ;;  %v1129_v55 = vsel %vm1121_vm7, %v1120_v7, %v1066_v8 }
 0x357   : > { %v1128_v9 = vsel %vm1121_vm7, %v1119_v12, %v1063_v31  ;;  %1138 = vst.msk [vmem:[%s2480_s18 + $0x38] sm:$0xff] %vm1130_vm8, %v1129_v55 }
 0x358   : > { %1137 = vst.msk [vmem:[%s2480_s18 + $0x30] sm:$0xff] %vm1130_vm8, %v1128_v9 }
 0x359 PF: > { %p1475_p11 = scmp.ge.s32.totalorder %s1721_s24, 2  ;;  %s1198_s29 = sand.u32 1, %s1709_s21  }
 0x35a   : > { %p2597_p12 = scmp.ne.s32.totalorder %s2585_s28, 0  ;;  %s1199_s20 = scalar_lea.sflag [#allocation4], %s1198_s29 }
 0x35c   : > { %p1464_p13 = pnand %p1475_p11, %p2597_p12 }
 0x35e   : > { %p1465_p0 = pneg %p1464_p13 }
 0x360   : > { %1700 = dma.done.wait (%p1465_p0), %s1199_s20, 512  }
 0x361   : > { %1702 = vsyncadd (%p1465_p0), %s1199_s20, 4294966784  ;;  %s1208_s26 = scalar_lea.sflag [#allocation10], %s1198_s29 }
 0x362   : > { %1704 = dma.done.wait (%p1465_p0), %s1208_s26, 1024  }
 0x363   : > { %1706 = vsyncadd (%p1465_p0), %s1208_s26, 4294966272  ;;  %p24_p5 = scmp.ge.s32.totalorder %s1846_s19, 6   ;;  %s2598_s21 = smov %s1713_s22 }
 0x364   : > { %s2599_s22 = smov %s1717_s23  ;;  %s2600_s23 = smov %s1862_s7 }
 0x365   : > { %s2601_s24 = smov %s1846_s19  ;;  %26 = sbr.rel (!%p24_p5) target bundleno = 8 (0x8), region = 118 }
 0x36a   :  { %1221 = vsyncpa [#allocation3], 1 }
 0x36b   :  { %1223 = vsyncpa [#allocation3 + $0x1], 1 }
 0x36c   :  { %1224 = vsyncpa [#allocation6], 1 }
 0x36d   :  { %1225 = vsyncpa [#allocation4], 1 }
 0x36e   :  { %1227 = vsyncpa [#allocation4 + $0x1], 1 }
 0x36f   :  { %1228 = vsyncpa [#allocation10], 1 }
 0x370   :  { %1230 = vsyncpa [#allocation10 + $0x1], 1 }

</bundles_post_ra>
